<compile_context>
chip_gen: v7x
topology: tpu7x:2x2x1
jax: 0.10.0
libtpu: 0.0.40
codegen_flags: <defaults>
</compile_context>

<pallas_src>
import functools
import math

import jax
import jax.numpy as jnp
from jax.experimental import pallas as pl
from jax.experimental.pallas import tpu as pltpu

HIDDEN = 16   # st_net output feature dim (pred heads are Linear(16, 2))
OUT = 2       # mean / variance output dim each


def _round_up(a, b):
    return ((a + b - 1) // b) * b


def _block_diag(w, g):
    """g-way block-diagonal expansion of w (a, b) -> (g*a, g*b)."""
    a, b = w.shape
    eye = jnp.eye(g, dtype=w.dtype)
    return jnp.einsum("ij,ab->iajb", eye, w).reshape(g * a, g * b)


def _causal_var_kernel(xg_ref, w1_ref, b1_ref, wm_ref, bm_ref, wv_ref, bv_ref,
                       mean_ref, var_ref, *, compute_dtype):
    # xg_ref: (tr, G*Din) — G tokens interleaved per 128-lane-multiple row.
    # TODO(synk): the real st_net is an arbitrary injected spatio-temporal network;
    # a deterministic pointwise Linear(Din->16)+ReLU stand-in is used here.
    x = xg_ref[...].astype(compute_dtype)
    h = jnp.dot(x, w1_ref[...], preferred_element_type=jnp.float32)   # (tr, G*16)
    h = jnp.maximum(h + b1_ref[...], 0.0)

    # TODO(synk): nn.Dropout(p=0.3) — eval-mode identity (training mode would use
    # pltpu.prng_seed / pltpu.stateful_bernoulli).

    hc = h.astype(compute_dtype)
    m = jnp.dot(hc, wm_ref[...], preferred_element_type=jnp.float32) + bm_ref[...]  # (tr, G*2)
    v = jnp.dot(hc, wv_ref[...], preferred_element_type=jnp.float32) + bv_ref[...]  # (tr, G*2)

    mean_ref[...] = m.astype(mean_ref.dtype)
    var_ref[...] = jnp.exp(v).astype(var_ref.dtype)   # exp only on the variance head (EUP)


@functools.partial(jax.jit, static_argnames=("tile_tokens", "compute_dtype"))
def causal_model_var_forward(x, params, *, tile_tokens=32768, compute_dtype=jnp.float32):
    """x: (B, T, N, Din) float32 -> (mean, variance): each (B, T, N, 2)."""
    B, T, N, Din = x.shape
    M = B * T * N

    # G tokens interleaved per row so the row width (G*Din) is a multiple of 128 lanes.
    G = 128 // math.gcd(128, Din)          # Din=4 -> 32 tokens / 128-lane row
    W = G * Din

    # Pad token count to a multiple of G (single zero-pad pass, only when ragged).
    M_pad = _round_up(M, G)
    x_flat = x.reshape(M, Din)
    if M_pad != M:
        x_flat = jnp.pad(x_flat, ((0, M_pad - M), (0, 0)))
    R = M_pad // G
    x_g = x_flat.reshape(R, W)             # zero-copy interleaved view (row-major)

    # Row tile: ~tile_tokens tokens per grid step; single tile when the whole problem
    # fits (no forced split on single-TC v5e/v6e).  Large M naturally gives >=4
    # parallel steps for v7x's 2 TensorCores at the 32K-token default.
    rows_per_tile = max(8, _round_up(max(1, tile_tokens // G), 8))
    if R <= rows_per_tile:
        rows_per_tile = R
    grid = pl.cdiv(R, rows_per_tile)

    # Block-diagonal weights (built once per call; ~0.5 MiB total for Din=4).
    # compute_dtype=bf16 keeps v5e mem-bound despite the G-fold MAC inflation.
    w1 = _block_diag(params["w_st"], G).astype(compute_dtype)            # (W, G*16)
    wm = _block_diag(params["w_mean"], G).astype(compute_dtype)          # (G*16, G*2)
    wv = _block_diag(params["w_var"], G).astype(compute_dtype)           # (G*16, G*2)
    b1 = jnp.tile(params["b_st"], G).reshape(1, G * HIDDEN).astype(jnp.float32)
    bm = jnp.tile(params["b_mean"], G).reshape(1, G * OUT).astype(jnp.float32)
    bv = jnp.tile(params["b_var"], G).reshape(1, G * OUT).astype(jnp.float32)

    itemsize = jnp.dtype(compute_dtype).itemsize
    cost = pl.CostEstimate(
        flops=2 * M_pad * G * (Din * HIDDEN + 2 * HIDDEN * OUT),   # actual (inflated) MACs
        transcendentals=OUT * M_pad,
        bytes_accessed=4 * M_pad * (Din + 2 * OUT)
        + itemsize * (W * G * HIDDEN + 2 * G * HIDDEN * G * OUT)
        + 4 * (G * HIDDEN + 2 * G * OUT),
    )

    full = lambda shape: pl.BlockSpec(shape, lambda i: (0, 0))

    kernel = functools.partial(_causal_var_kernel, compute_dtype=compute_dtype)

    mean_g, var_g = pl.pallas_call(
        kernel,
        out_shape=(jax.ShapeDtypeStruct((R, G * OUT), x.dtype),
                   jax.ShapeDtypeStruct((R, G * OUT), x.dtype)),
        grid_spec=pltpu.PrefetchScalarGridSpec(
            num_scalar_prefetch=0,
            grid=(grid,),
            in_specs=[
                pl.BlockSpec((rows_per_tile, W), lambda i: (i, 0)),   # interleaved tokens
                full((W, G * HIDDEN)),                                # block-diag st-net W
                full((1, G * HIDDEN)),                                # tiled st-net bias
                full((G * HIDDEN, G * OUT)),                          # block-diag mean head
                full((1, G * OUT)),                                   # tiled mean bias
                full((G * HIDDEN, G * OUT)),                          # block-diag var head
                full((1, G * OUT)),                                   # tiled var bias
            ],
            out_specs=[
                pl.BlockSpec((rows_per_tile, G * OUT), lambda i: (i, 0)),   # mean
                pl.BlockSpec((rows_per_tile, G * OUT), lambda i: (i, 0)),   # variance
            ],
        ),
        compiler_params=pltpu.CompilerParams(
            dimension_semantics=("parallel",),
            vmem_limit_bytes=32 * 1024 * 1024,   # ~6-7 MiB live at default tile; safe on v7x
        ),
        cost_estimate=cost,
    )(x_g, w1, b1, wm, bm, wv, bv)

    # (R, G*OUT) row-major == (M_pad, OUT): free reshape; slice only when ragged.
    mean = mean_g.reshape(M_pad, OUT)[:M].reshape(B, T, N, OUT)
    var = var_g.reshape(M_pad, OUT)[:M].reshape(B, T, N, OUT)
    return mean, var


def init_params(key, feat_in):
    """Deterministic parameter init (shapes from the module's __init__)."""
    k1, k2, k3 = jax.random.split(key, 3)
    scale_st = 1.0 / jnp.sqrt(feat_in)
    scale_h = 1.0 / jnp.sqrt(HIDDEN)
    return {
        "w_st":   jax.random.normal(k1, (feat_in, HIDDEN), jnp.float32) * scale_st,
        "b_st":   jnp.zeros((HIDDEN,), jnp.float32),
        "w_mean": jax.random.normal(k2, (HIDDEN, OUT), jnp.float32) * scale_h,
        "b_mean": jnp.zeros((OUT,), jnp.float32),
        "w_var":  jax.random.normal(k3, (HIDDEN, OUT), jnp.float32) * scale_h,
        "b_var":  jnp.zeros((OUT,), jnp.float32),
    }


def _reference(x, params):
    """Pure-JAX reference for correctness checking."""
    h = jnp.maximum(x @ params["w_st"] + params["b_st"], 0.0)
    mean = h @ params["w_mean"] + params["b_mean"]
    var = jnp.exp(h @ params["w_var"] + params["b_var"])
    return mean, var


if __name__ == "__main__":
    key = jax.random.PRNGKey(0)
    kx, kp = jax.random.split(key)

    # shapes consistent with the module's forward:
    # (batch=2, input_window=8, num_nodes=16, feature_dim_in=4) -> M=256 tokens
    B, T, N, Din = 2, 8, 16, 4
    x = jax.random.normal(kx, (B, T, N, Din), jnp.float32)
    params = init_params(kp, Din)

    mean, var = causal_model_var_forward(x, params)
    jax.block_until_ready((mean, var))

    ref_mean, ref_var = _reference(x, params)
    assert mean.shape == (B, T, N, OUT) and var.shape == (B, T, N, OUT)
    assert jnp.allclose(mean, ref_mean, atol=2e-5, rtol=2e-5)
    assert jnp.allclose(var, ref_var, atol=2e-5, rtol=2e-5)
    assert bool(jnp.all(var > 0.0))

    # ragged token count (padding path)
    x2 = jax.random.normal(kx, (3, 7, 11, Din), jnp.float32)
    m2, v2 = causal_model_var_forward(x2, params)
    jax.block_until_ready((m2, v2))
    rm2, rv2 = _reference(x2, params)
    assert jnp.allclose(m2, rm2, atol=2e-5, rtol=2e-5)
    assert jnp.allclose(v2, rv2, atol=2e-5, rtol=2e-5)

    # multi-step grid path (forces several row tiles)
    x3 = jax.random.normal(kx, (2, 8, 1024, Din), jnp.float32)
    m3, v3 = causal_model_var_forward(x3, params, tile_tokens=4096)
    jax.block_until_ready((m3, v3))
    rm3, rv3 = _reference(x3, params)
    assert jnp.allclose(m3, rm3, atol=2e-5, rtol=2e-5)
    assert jnp.allclose(v3, rv3, atol=2e-5, rtol=2e-5)

    print("KERNEL_OK")
</pallas_src>

<mosaic_0001>
module attributes {stable_mosaic.version = 11 : i64} {
  func.func @_causal_var_kernel(%arg0: i32, %arg1: memref<8x128xf32, #tpu.memory_space<vmem>>, %arg2: memref<128x512xf32, #tpu.memory_space<vmem>>, %arg3: memref<1x512xf32, #tpu.memory_space<vmem>>, %arg4: memref<512x64xf32, #tpu.memory_space<vmem>>, %arg5: memref<1x64xf32, #tpu.memory_space<vmem>>, %arg6: memref<512x64xf32, #tpu.memory_space<vmem>>, %arg7: memref<1x64xf32, #tpu.memory_space<vmem>>, %arg8: memref<8x64xf32, #tpu.memory_space<vmem>>, %arg9: memref<8x64xf32, #tpu.memory_space<vmem>>) attributes {dimension_semantics = [#tpu.dimension_semantics<parallel>], iteration_bounds = array<i64: 1>, scalar_prefetch = 0 : i64, scratch_operands = 0 : i64, tpu.core_type = #tpu.core_type<tc>, window_params = [{transform_indices = @transform_0, window_bounds = array<i64: 8, 128>}, {pipeline_mode = #tpu.pipeline_mode<synchronous>, transform_indices = @transform_1, window_bounds = array<i64: 128, 512>}, {pipeline_mode = #tpu.pipeline_mode<synchronous>, transform_indices = @transform_2, window_bounds = array<i64: 1, 512>}, {pipeline_mode = #tpu.pipeline_mode<synchronous>, transform_indices = @transform_3, window_bounds = array<i64: 512, 64>}, {pipeline_mode = #tpu.pipeline_mode<synchronous>, transform_indices = @transform_4, window_bounds = array<i64: 1, 64>}, {pipeline_mode = #tpu.pipeline_mode<synchronous>, transform_indices = @transform_5, window_bounds = array<i64: 512, 64>}, {pipeline_mode = #tpu.pipeline_mode<synchronous>, transform_indices = @transform_6, window_bounds = array<i64: 1, 64>}, {transform_indices = @transform_7, window_bounds = array<i64: 8, 64>}, {transform_indices = @transform_8, window_bounds = array<i64: 8, 64>}]} {
    %c0 = arith.constant 0 : index
    %c0_0 = arith.constant 0 : index
    %0 = vector.load %arg1[%c0, %c0_0] : memref<8x128xf32, #tpu.memory_space<vmem>>, vector<8x128xf32>
    %c0_1 = arith.constant 0 : index
    %c0_2 = arith.constant 0 : index
    %1 = vector.load %arg2[%c0_1, %c0_2] : memref<128x512xf32, #tpu.memory_space<vmem>>, vector<128x512xf32>
    %cst = arith.constant dense<0.000000e+00> : vector<8x512xf32>
    %2 = tpu.matmul %0, %1, %cst {dimension_numbers = #tpu.dot_dimension_numbers<[1], [0], [0], [1], [0, 0, 1, 1], [], []>} : vector<8x128xf32>, vector<128x512xf32>, vector<8x512xf32> -> vector<8x512xf32>
    %c0_3 = arith.constant 0 : index
    %c0_4 = arith.constant 0 : index
    %3 = vector.load %arg3[%c0_3, %c0_4] : memref<1x512xf32, #tpu.memory_space<vmem>>, vector<1x512xf32>
    %4 = vector.broadcast %3 : vector<1x512xf32> to vector<8x512xf32>
    %5 = arith.addf %2, %4 : vector<8x512xf32>
    %cst_5 = arith.constant 0.000000e+00 : f32
    %6 = vector.broadcast %cst_5 : f32 to vector<8x512xf32>
    %7 = arith.maximumf %5, %6 : vector<8x512xf32>
    %c0_6 = arith.constant 0 : index
    %c0_7 = arith.constant 0 : index
    %8 = vector.load %arg4[%c0_6, %c0_7] : memref<512x64xf32, #tpu.memory_space<vmem>>, vector<512x64xf32>
    %cst_8 = arith.constant dense<0.000000e+00> : vector<8x64xf32>
    %9 = tpu.matmul %7, %8, %cst_8 {dimension_numbers = #tpu.dot_dimension_numbers<[1], [0], [0], [1], [0, 0, 1, 1], [], []>} : vector<8x512xf32>, vector<512x64xf32>, vector<8x64xf32> -> vector<8x64xf32>
    %c0_9 = arith.constant 0 : index
    %c0_10 = arith.constant 0 : index
    %10 = vector.load %arg5[%c0_9, %c0_10] : memref<1x64xf32, #tpu.memory_space<vmem>>, vector<1x64xf32>
    %11 = vector.broadcast %10 : vector<1x64xf32> to vector<8x64xf32>
    %12 = arith.addf %9, %11 : vector<8x64xf32>
    %c0_11 = arith.constant 0 : index
    %c0_12 = arith.constant 0 : index
    %13 = vector.load %arg6[%c0_11, %c0_12] : memref<512x64xf32, #tpu.memory_space<vmem>>, vector<512x64xf32>
    %cst_13 = arith.constant dense<0.000000e+00> : vector<8x64xf32>
    %14 = tpu.matmul %7, %13, %cst_13 {dimension_numbers = #tpu.dot_dimension_numbers<[1], [0], [0], [1], [0, 0, 1, 1], [], []>} : vector<8x512xf32>, vector<512x64xf32>, vector<8x64xf32> -> vector<8x64xf32>
    %c0_14 = arith.constant 0 : index
    %c0_15 = arith.constant 0 : index
    %15 = vector.load %arg7[%c0_14, %c0_15] : memref<1x64xf32, #tpu.memory_space<vmem>>, vector<1x64xf32>
    %16 = vector.broadcast %15 : vector<1x64xf32> to vector<8x64xf32>
    %17 = arith.addf %14, %16 : vector<8x64xf32>
    %c0_16 = arith.constant 0 : index
    %c0_17 = arith.constant 0 : index
    %18 = vector.load %arg8[%c0_16, %c0_17] : memref<8x64xf32, #tpu.memory_space<vmem>>, vector<8x64xf32>
    tpu.vector_store %arg8[%c0_16, %c0_17], %12 {strides = array<i32>} : memref<8x64xf32, #tpu.memory_space<vmem>>, vector<8x64xf32>,
    %19 = math.exp %17 : vector<8x64xf32>
    %c0_18 = arith.constant 0 : index
    %c0_19 = arith.constant 0 : index
    %20 = vector.load %arg9[%c0_18, %c0_19] : memref<8x64xf32, #tpu.memory_space<vmem>>, vector<8x64xf32>
    tpu.vector_store %arg9[%c0_18, %c0_19], %19 {strides = array<i32>} : memref<8x64xf32, #tpu.memory_space<vmem>>, vector<8x64xf32>,
    return
  }
  func.func @transform_0(%arg0: i32) -> (i32, i32) {
    %c0_i32 = arith.constant 0 : i32
    %c0_i32_0 = arith.constant 0 : i32
    return %arg0, %c0_i32 : i32, i32
  }
  func.func @transform_1(%arg0: i32) -> (i32, i32) {
    %c0_i32 = arith.constant 0 : i32
    %c0_i32_0 = arith.constant 0 : i32
    %c0_i32_1 = arith.constant 0 : i32
    return %c0_i32, %c0_i32_0 : i32, i32
  }
  func.func @transform_2(%arg0: i32) -> (i32, i32) {
    %c0_i32 = arith.constant 0 : i32
    %c0_i32_0 = arith.constant 0 : i32
    %c0_i32_1 = arith.constant 0 : i32
    return %c0_i32, %c0_i32_0 : i32, i32
  }
  func.func @transform_3(%arg0: i32) -> (i32, i32) {
    %c0_i32 = arith.constant 0 : i32
    %c0_i32_0 = arith.constant 0 : i32
    %c0_i32_1 = arith.constant 0 : i32
    return %c0_i32, %c0_i32_0 : i32, i32
  }
  func.func @transform_4(%arg0: i32) -> (i32, i32) {
    %c0_i32 = arith.constant 0 : i32
    %c0_i32_0 = arith.constant 0 : i32
    %c0_i32_1 = arith.constant 0 : i32
    return %c0_i32, %c0_i32_0 : i32, i32
  }
  func.func @transform_5(%arg0: i32) -> (i32, i32) {
    %c0_i32 = arith.constant 0 : i32
    %c0_i32_0 = arith.constant 0 : i32
    %c0_i32_1 = arith.constant 0 : i32
    return %c0_i32, %c0_i32_0 : i32, i32
  }
  func.func @transform_6(%arg0: i32) -> (i32, i32) {
    %c0_i32 = arith.constant 0 : i32
    %c0_i32_0 = arith.constant 0 : i32
    %c0_i32_1 = arith.constant 0 : i32
    return %c0_i32, %c0_i32_0 : i32, i32
  }
  func.func @transform_7(%arg0: i32) -> (i32, i32) {
    %c0_i32 = arith.constant 0 : i32
    %c0_i32_0 = arith.constant 0 : i32
    return %arg0, %c0_i32 : i32, i32
  }
  func.func @transform_8(%arg0: i32) -> (i32, i32) {
    %c0_i32 = arith.constant 0 : i32
    %c0_i32_0 = arith.constant 0 : i32
    return %arg0, %c0_i32 : i32, i32
  }
}

</mosaic_0001>

<bundles_post_ra>
// kernel: tile.18
= control target key start
LH: loop header
LB: loop body
LE: loop exit
PB: predicated region body
PF: predicated region fallthrough
CT: control target
= control target key end

     0   :  { %s40_s0 = inlined_call_operand.vmem [shape: f32[16], index: 0, kind: input, shape index: {}]   ;;  %s41_s1 = inlined_call_operand.vmem [shape: f32[32,16], index: 1, kind: output, shape index: {}]  }
   0x1   :  { %v4_v0 = vld [vmem:[%s40_s0] ss:$0 sm:$0xff] }
   0x2   :  { %5 = vst [vmem:[%s41_s1] sm:$0xff] %v4_v0  ;;  %12 = vst [vmem:[%s41_s1 + $0x8] sm:$0xff] %v4_v0 }
   0x3   :  { %13 = vst [vmem:[%s41_s1 + $0x10] sm:$0xff] %v4_v0  ;;  %14 = vst [vmem:[%s41_s1 + $0x18] sm:$0xff] %v4_v0 }

// kernel: tile.19
= control target key start
LH: loop header
LB: loop body
LE: loop exit
PB: predicated region body
PF: predicated region fallthrough
CT: control target
= control target key end

     0   :  { %s89_s8 = smov 112   ;;  %s90_s11 = smov 80   ;;  %vm3_vm0 = vcmask 130048   ;;  %vm9_vm1 = vcmask 1048448   ;;  %vm15_vm2 = vcmask 917248   ;;  %vm21_vm3 = vcmask 786048   ;;  %s142_s0 = inlined_call_operand.vmem [shape: f32[32,16], index: 0, kind: input, shape index: {}]   ;;  %s143_s1 = inlined_call_operand.vmem [shape: f32[1,512], index: 1, kind: output, shape index: {}]  }
   0x1   :  { %v72_v0 = vld [vmem:[%s142_s0 + $0x7] ss:$8 sm:$0xf]   ;;  %v74_v1 = vld [vmem:[%s142_s0 + $0x5] ss:$8 sm:$0xf]  }
   0x2   :  { %7 = vrot.lane.b32.xlu0 %v72_v0, %s89_s8  ;;  %19 = vrot.lane.b32.xlu1 %v74_v1, %s90_s11  ;;  %v73_v2 = vld [vmem:[%s142_s0 + $0x6] ss:$8 sm:$0xf]   ;;  %v75_v3 = vld [vmem:[%s142_s0 + $0x4] ss:$8 sm:$0xf]  }
   0x3   :  { %s91_s16 = smov 96   ;;  %v2_v4 = vld [vmem:[%s142_s0] ss:$8 sm:$0xf]   ;;  %s92_s19 = smov 64   ;;  %vm27_vm4 = vcmask 654848  }
   0x4   :  { %v76_v5 = vld [vmem:[%s142_s0 + $0x3] ss:$8 sm:$0xf]   ;;  %4 = vst.msk [vmem:[#allocation0] ss:$8 sm:$0xf] %vm3_vm0, %v2_v4  }
   0x5   :  { %v77_v6 = vld [vmem:[%s142_s0 + $0x2] ss:$8 sm:$0xf]   ;;  %s93_s24 = smov 48   ;;  %s94_s25 = smov 32   ;;  %vm33_vm5 = vcmask 523648  }
   0x6   :  { %13 = vrot.lane.b32.xlu0 %v73_v2, %s91_s16  ;;  %25 = vrot.lane.b32.xlu1 %v75_v3, %s92_s19  ;;  %v78_v7 = vld [vmem:[%s142_s0 + $0x1] ss:$8 sm:$0xf]   ;;  %s95_s0 = smov 16   ;;  %vm39_vm6 = vcmask 392448   ;;  %vm45_vm7 = vcmask 261248  }
   0xa   :  { %31 = vrot.lane.b32.xlu0 %v76_v5, %s93_s24  ;;  %37 = vrot.lane.b32.xlu1 %v77_v6, %s94_s25 }
   0xe   :  { %43 = vrot.lane.b32.xlu0 %v78_v7, %s95_s0 }
  0x74   :  { %v8_v8 = vpop.permute.xlu0 %7   ;;  %v20_v9 = vpop.permute.xlu1 %19  }
  0x75   :  { %10 = vst.msk [vmem:[#allocation0] ss:$8 sm:$0xf] %vm9_vm1, %v8_v8  }
  0x78   :  { %v14_v10 = vpop.permute.xlu0 %13   ;;  %v26_v11 = vpop.permute.xlu1 %25  }
  0x79   :  { %16 = vst.msk [vmem:[#allocation0] ss:$8 sm:$0xf] %vm15_vm2, %v14_v10  }
  0x7a   :  { %22 = vst.msk [vmem:[#allocation0] ss:$8 sm:$0xf] %vm21_vm3, %v20_v9  }
  0x7b   :  { %28 = vst.msk [vmem:[#allocation0] ss:$8 sm:$0xf] %vm27_vm4, %v26_v11  }
  0x7c   :  { %v32_v12 = vpop.permute.xlu0 %31   ;;  %v38_v13 = vpop.permute.xlu1 %37  }
  0x7d   :  { %34 = vst.msk [vmem:[#allocation0] ss:$8 sm:$0xf] %vm33_vm5, %v32_v12  }
  0x7e   :  { %40 = vst.msk [vmem:[#allocation0] ss:$8 sm:$0xf] %vm39_vm6, %v38_v13  }
  0x80   :  { %v44_v14 = vpop.permute.xlu0 %43  }
  0x81   :  { %46 = vst.msk [vmem:[#allocation0] ss:$8 sm:$0xf] %vm45_vm7, %v44_v14  }
  0x88   :  { %v50_v15 = vld [vmem:[#allocation0] sm:$0x1]  ;;  %v54_v16 = vld [vmem:[#allocation0 + $0x8] sm:$0x1]  ;;  %v59_v17 = vld [vmem:[#allocation0 + $0x10] sm:$0x1] }
  0x89   :  { %52 = vst [vmem:[%s143_s1] sm:$0x1] %v50_v15  ;;  %79 = vst [vmem:[%s143_s1 + $0x1] sm:$0x1] %v54_v16  ;;  %v65_v18 = vld [vmem:[#allocation0 + $0x18] sm:$0x1] }
  0x8a   :  { %80 = vst [vmem:[%s143_s1 + $0x2] sm:$0x1] %v59_v17  ;;  %81 = vst [vmem:[%s143_s1 + $0x3] sm:$0x1] %v65_v18 }

// kernel: tile.23
= control target key start
LH: loop header
LB: loop body
LE: loop exit
PB: predicated region body
PF: predicated region fallthrough
CT: control target
= control target key end

     0   :  { %s40_s0 = inlined_call_operand.vmem [shape: f32[2], index: 0, kind: input, shape index: {}]   ;;  %s41_s1 = inlined_call_operand.vmem [shape: f32[32,2], index: 1, kind: output, shape index: {}]  }
   0x1   :  { %v4_v0 = vld [vmem:[%s40_s0] ss:$0 sm:$0xff] }
   0x2   :  { %5 = vst [vmem:[%s41_s1] sm:$0xff] %v4_v0  ;;  %12 = vst [vmem:[%s41_s1 + $0x8] sm:$0xff] %v4_v0 }
   0x3   :  { %13 = vst [vmem:[%s41_s1 + $0x10] sm:$0xff] %v4_v0  ;;  %14 = vst [vmem:[%s41_s1 + $0x18] sm:$0xff] %v4_v0 }

// kernel: tile.24
= control target key start
LH: loop header
LB: loop body
LE: loop exit
PB: predicated region body
PF: predicated region fallthrough
CT: control target
= control target key end

     0   :  { %s259_s10 = smov 62   ;;  %s260_s11 = smov 58   ;;  %vm3_vm0 = vcmask 15360   ;;  %vm9_vm1 = vcmask 523760   ;;  %vm15_vm2 = vcmask 507360   ;;  %vm21_vm3 = vcmask 490960   ;;  %s399_s0 = inlined_call_operand.vmem [shape: f32[32,2], index: 0, kind: input, shape index: {}]   ;;  %s400_s1 = inlined_call_operand.vmem [shape: f32[1,64], index: 1, kind: output, shape index: {}]  }
   0x1   :  { %v197_v0 = vld [vmem:[%s399_s0 + $0x1f] sm:$0x1]   ;;  %v199_v1 = vld [vmem:[%s399_s0 + $0x1d] sm:$0x1]   ;;  %v198_v2 = vld [vmem:[%s399_s0 + $0x1e] sm:$0x1]  }
   0x2   :  { %7 = vrot.lane.b32.xlu0 %v197_v0, %s259_s10  ;;  %19 = vrot.lane.b32.xlu1 %v199_v1, %s260_s11  ;;  %v200_v3 = vld [vmem:[%s399_s0 + $0x1c] sm:$0x1]   ;;  %s261_s16 = smov 60   ;;  %s262_s17 = smov 56   ;;  %v201_v4 = vld [vmem:[%s399_s0 + $0x1b] sm:$0x1]  }
   0x3   :  { %v202_v5 = vld [vmem:[%s399_s0 + $0x1a] sm:$0x1]   ;;  %s263_s22 = smov 54   ;;  %s264_s23 = smov 52   ;;  %v203_v6 = vld [vmem:[%s399_s0 + $0x19] sm:$0x1]  }
   0x4   :  { %v204_v7 = vld [vmem:[%s399_s0 + $0x18] sm:$0x1]   ;;  %s265_s28 = smov 50   ;;  %s266_s29 = smov 48   ;;  %v205_v8 = vld [vmem:[%s399_s0 + $0x17] sm:$0x1]  }
   0x5   :  { %v206_v9 = vld [vmem:[%s399_s0 + $0x16] sm:$0x1]   ;;  %v2_v10 = vld [vmem:[%s399_s0] sm:$0x1]   ;;  %s267_s7 = smov 46   ;;  %s268_s8 = smov 44  }
   0x6   :  { %13 = vrot.lane.b32.xlu0 %v198_v2, %s261_s16  ;;  %25 = vrot.lane.b32.xlu1 %v200_v3, %s262_s17  ;;  %4 = vst.msk [vmem:[#allocation0] sm:$0x1] %vm3_vm0, %v2_v10   ;;  %v207_v11 = vld [vmem:[%s399_s0 + $0x15] sm:$0x1]   ;;  %v208_v12 = vld [vmem:[%s399_s0 + $0x14] sm:$0x1]  }
   0x7   :  { %s269_s13 = smov 42   ;;  %s270_s14 = smov 40   ;;  %v209_v13 = vld [vmem:[%s399_s0 + $0x13] sm:$0x1]   ;;  %v210_v14 = vld [vmem:[%s399_s0 + $0x12] sm:$0x1]  }
   0x8   :  { %s271_s19 = smov 38   ;;  %s272_s20 = smov 36   ;;  %v211_v15 = vld [vmem:[%s399_s0 + $0x11] sm:$0x1]   ;;  %v212_v16 = vld [vmem:[%s399_s0 + $0x10] sm:$0x1]  }
   0x9   :  { %s273_s25 = smov 34   ;;  %s274_s26 = smov 32   ;;  %v213_v17 = vld [vmem:[%s399_s0 + $0xf] sm:$0x1]   ;;  %v214_v18 = vld [vmem:[%s399_s0 + $0xe] sm:$0x1]  }
   0xa   :  { %31 = vrot.lane.b32.xlu0 %v201_v4, %s263_s22  ;;  %37 = vrot.lane.b32.xlu1 %v202_v5, %s264_s23  ;;  %s275_s2 = smov 30   ;;  %s276_s3 = smov 28   ;;  %v215_v19 = vld [vmem:[%s399_s0 + $0xd] sm:$0x1]   ;;  %v216_v20 = vld [vmem:[%s399_s0 + $0xc] sm:$0x1]  }
   0xb   :  { %s278_s9 = smov 24   ;;  %v217_v21 = vld [vmem:[%s399_s0 + $0xb] sm:$0x1]   ;;  %v218_v22 = vld [vmem:[%s399_s0 + $0xa] sm:$0x1]   ;;  %s280_s15 = smov 20  }
   0xc   :  { %v219_v23 = vld [vmem:[%s399_s0 + $0x9] sm:$0x1]   ;;  %v220_v24 = vld [vmem:[%s399_s0 + $0x8] sm:$0x1]   ;;  %s282_s21 = smov 16   ;;  %s284_s27 = smov 12  }
   0xd   :  { %v221_v25 = vld [vmem:[%s399_s0 + $0x7] sm:$0x1]   ;;  %v222_v26 = vld [vmem:[%s399_s0 + $0x6] sm:$0x1]   ;;  %v223_v27 = vld [vmem:[%s399_s0 + $0x5] sm:$0x1]  }
   0xe   :  { %43 = vrot.lane.b32.xlu0 %v203_v6, %s265_s28  ;;  %49 = vrot.lane.b32.xlu1 %v204_v7, %s266_s29  ;;  %v224_v28 = vld [vmem:[%s399_s0 + $0x4] sm:$0x1]   ;;  %s286_s4 = smov 8   ;;  %v225_v29 = vld [vmem:[%s399_s0 + $0x3] sm:$0x1]   ;;  %s288_s10 = smov 4  }
   0xf   :  { %v226_v30 = vld [vmem:[%s399_s0 + $0x2] sm:$0x1]   ;;  %v227_v31 = vld [vmem:[%s399_s0 + $0x1] sm:$0x1]   ;;  %s289_s0 = smov 2   ;;  %vm27_vm4 = vcmask 474560  }
  0x10   :  { %vm33_vm5 = vcmask 458160   ;;  %vm39_vm6 = vcmask 441760   ;;  %vm45_vm7 = vcmask 425360   ;;  %vm51_vm8 = vcmask 408960  }
  0x11   :  { %vm57_vm9 = vcmask 392560   ;;  %vm63_vm10 = vcmask 376160   ;;  %vm69_vm11 = vcmask 359760   ;;  %vm75_vm12 = vcmask 343360  }
  0x12   :  { %55 = vrot.lane.b32.xlu0 %v205_v8, %s267_s7  ;;  %61 = vrot.lane.b32.xlu1 %v206_v9, %s268_s8  ;;  %s277_s8 = smov 26   ;;  %vm81_vm13 = vcmask 326960   ;;  %vm87_vm14 = vcmask 310560   ;;  %vm93_vm15 = vcmask 294160   ;;  %vm99_vm0 = vcmask 277760  }
  0x16   :  { %67 = vrot.lane.b32.xlu0 %v207_v11, %s269_s13  ;;  %73 = vrot.lane.b32.xlu1 %v208_v12, %s270_s14  ;;  %s279_s14 = smov 22  }
  0x1a   :  { %79 = vrot.lane.b32.xlu0 %v209_v13, %s271_s19  ;;  %85 = vrot.lane.b32.xlu1 %v210_v14, %s272_s20  ;;  %s281_s20 = smov 18  }
  0x1e   :  { %91 = vrot.lane.b32.xlu0 %v211_v15, %s273_s25  ;;  %97 = vrot.lane.b32.xlu1 %v212_v16, %s274_s26  ;;  %s283_s26 = smov 14  }
  0x22   :  { %103 = vrot.lane.b32.xlu0 %v213_v17, %s275_s2  ;;  %109 = vrot.lane.b32.xlu1 %v214_v18, %s276_s3  ;;  %s285_s3 = smov 10  }
  0x26   :  { %115 = vrot.lane.b32.xlu0 %v215_v19, %s277_s8  ;;  %121 = vrot.lane.b32.xlu1 %v216_v20, %s278_s9  ;;  %s287_s9 = smov 6  }
  0x2a   :  { %127 = vrot.lane.b32.xlu0 %v217_v21, %s279_s14  ;;  %133 = vrot.lane.b32.xlu1 %v218_v22, %s280_s15 }
  0x2e   :  { %139 = vrot.lane.b32.xlu0 %v219_v23, %s281_s20  ;;  %145 = vrot.lane.b32.xlu1 %v220_v24, %s282_s21 }
  0x32   :  { %151 = vrot.lane.b32.xlu0 %v221_v25, %s283_s26  ;;  %157 = vrot.lane.b32.xlu1 %v222_v26, %s284_s27 }
  0x36   :  { %163 = vrot.lane.b32.xlu0 %v223_v27, %s285_s3  ;;  %169 = vrot.lane.b32.xlu1 %v224_v28, %s286_s4 }
  0x3a   :  { %175 = vrot.lane.b32.xlu0 %v225_v29, %s287_s9  ;;  %181 = vrot.lane.b32.xlu1 %v226_v30, %s288_s10 }
  0x3e   :  { %187 = vrot.lane.b32.xlu0 %v227_v31, %s289_s0 }
  0x74   :  { %v8_v32 = vpop.permute.xlu0 %7   ;;  %v20_v33 = vpop.permute.xlu1 %19  }
  0x75   :  { %10 = vst.msk [vmem:[#allocation0] sm:$0x1] %vm9_vm1, %v8_v32   ;;  %vm105_vm1 = vcmask 261360  }
  0x78   :  { %v14_v34 = vpop.permute.xlu0 %13   ;;  %v26_v35 = vpop.permute.xlu1 %25  }
  0x79   :  { %16 = vst.msk [vmem:[#allocation0] sm:$0x1] %vm15_vm2, %v14_v34   ;;  %vm111_vm2 = vcmask 244960  }
  0x7a   :  { %22 = vst.msk [vmem:[#allocation0] sm:$0x1] %vm21_vm3, %v20_v33   ;;  %vm117_vm3 = vcmask 228560  }
  0x7b   :  { %28 = vst.msk [vmem:[#allocation0] sm:$0x1] %vm27_vm4, %v26_v35   ;;  %vm123_vm4 = vcmask 212160  }
  0x7c   :  { %v32_v36 = vpop.permute.xlu0 %31   ;;  %v38_v37 = vpop.permute.xlu1 %37  }
  0x7d   :  { %34 = vst.msk [vmem:[#allocation0] sm:$0x1] %vm33_vm5, %v32_v36   ;;  %vm129_vm5 = vcmask 195760  }
  0x7e   :  { %40 = vst.msk [vmem:[#allocation0] sm:$0x1] %vm39_vm6, %v38_v37   ;;  %vm135_vm6 = vcmask 179360  }
  0x80   :  { %v44_v38 = vpop.permute.xlu0 %43   ;;  %v50_v39 = vpop.permute.xlu1 %49  }
  0x81   :  { %46 = vst.msk [vmem:[#allocation0] sm:$0x1] %vm45_vm7, %v44_v38   ;;  %vm141_vm7 = vcmask 162960  }
  0x82   :  { %52 = vst.msk [vmem:[#allocation0] sm:$0x1] %vm51_vm8, %v50_v39   ;;  %vm147_vm8 = vcmask 146560  }
  0x84   :  { %v56_v40 = vpop.permute.xlu0 %55   ;;  %v62_v41 = vpop.permute.xlu1 %61  }
  0x85   :  { %58 = vst.msk [vmem:[#allocation0] sm:$0x1] %vm57_vm9, %v56_v40   ;;  %vm153_vm9 = vcmask 130160  }
  0x86   :  { %64 = vst.msk [vmem:[#allocation0] sm:$0x1] %vm63_vm10, %v62_v41   ;;  %vm159_vm10 = vcmask 113760  }
  0x88   :  { %v68_v42 = vpop.permute.xlu0 %67   ;;  %v74_v43 = vpop.permute.xlu1 %73  }
  0x89   :  { %70 = vst.msk [vmem:[#allocation0] sm:$0x1] %vm69_vm11, %v68_v42   ;;  %vm165_vm11 = vcmask 97360  }
  0x8a   :  { %76 = vst.msk [vmem:[#allocation0] sm:$0x1] %vm75_vm12, %v74_v43   ;;  %vm171_vm12 = vcmask 80960  }
  0x8c   :  { %v80_v44 = vpop.permute.xlu0 %79   ;;  %v86_v45 = vpop.permute.xlu1 %85  }
  0x8d   :  { %82 = vst.msk [vmem:[#allocation0] sm:$0x1] %vm81_vm13, %v80_v44   ;;  %vm177_vm13 = vcmask 64560  }
  0x8e   :  { %88 = vst.msk [vmem:[#allocation0] sm:$0x1] %vm87_vm14, %v86_v45   ;;  %vm183_vm14 = vcmask 48160  }
  0x90   :  { %v92_v46 = vpop.permute.xlu0 %91   ;;  %v98_v47 = vpop.permute.xlu1 %97  }
  0x91   :  { %94 = vst.msk [vmem:[#allocation0] sm:$0x1] %vm93_vm15, %v92_v46   ;;  %vm189_vm15 = vcmask 31760  }
  0x92   :  { %100 = vst.msk [vmem:[#allocation0] sm:$0x1] %vm99_vm0, %v98_v47  }
  0x94   :  { %v104_v48 = vpop.permute.xlu0 %103   ;;  %v110_v49 = vpop.permute.xlu1 %109  }
  0x95   :  { %106 = vst.msk [vmem:[#allocation0] sm:$0x1] %vm105_vm1, %v104_v48  }
  0x96   :  { %112 = vst.msk [vmem:[#allocation0] sm:$0x1] %vm111_vm2, %v110_v49  }
  0x98   :  { %v116_v50 = vpop.permute.xlu0 %115   ;;  %v122_v51 = vpop.permute.xlu1 %121  }
  0x99   :  { %118 = vst.msk [vmem:[#allocation0] sm:$0x1] %vm117_vm3, %v116_v50  }
  0x9a   :  { %124 = vst.msk [vmem:[#allocation0] sm:$0x1] %vm123_vm4, %v122_v51  }
  0x9c   :  { %v128_v52 = vpop.permute.xlu0 %127   ;;  %v134_v53 = vpop.permute.xlu1 %133  }
  0x9d   :  { %130 = vst.msk [vmem:[#allocation0] sm:$0x1] %vm129_vm5, %v128_v52  }
  0x9e   :  { %136 = vst.msk [vmem:[#allocation0] sm:$0x1] %vm135_vm6, %v134_v53  }
  0xa0   :  { %v140_v54 = vpop.permute.xlu0 %139   ;;  %v146_v55 = vpop.permute.xlu1 %145  }
  0xa1   :  { %142 = vst.msk [vmem:[#allocation0] sm:$0x1] %vm141_vm7, %v140_v54  }
  0xa2   :  { %148 = vst.msk [vmem:[#allocation0] sm:$0x1] %vm147_vm8, %v146_v55  }
  0xa4   :  { %v152_v56 = vpop.permute.xlu0 %151   ;;  %v158_v57 = vpop.permute.xlu1 %157  }
  0xa5   :  { %154 = vst.msk [vmem:[#allocation0] sm:$0x1] %vm153_vm9, %v152_v56  }
  0xa6   :  { %160 = vst.msk [vmem:[#allocation0] sm:$0x1] %vm159_vm10, %v158_v57  }
  0xa8   :  { %v164_v58 = vpop.permute.xlu0 %163   ;;  %v170_v59 = vpop.permute.xlu1 %169  }
  0xa9   :  { %166 = vst.msk [vmem:[#allocation0] sm:$0x1] %vm165_vm11, %v164_v58  }
  0xaa   :  { %172 = vst.msk [vmem:[#allocation0] sm:$0x1] %vm171_vm12, %v170_v59  }
  0xac   :  { %v176_v60 = vpop.permute.xlu0 %175   ;;  %v182_v61 = vpop.permute.xlu1 %181  }
  0xad   :  { %178 = vst.msk [vmem:[#allocation0] sm:$0x1] %vm177_vm13, %v176_v60  }
  0xae   :  { %184 = vst.msk [vmem:[#allocation0] sm:$0x1] %vm183_vm14, %v182_v61  }
  0xb0   :  { %v188_v62 = vpop.permute.xlu0 %187  }
  0xb1   :  { %190 = vst.msk [vmem:[#allocation0] sm:$0x1] %vm189_vm15, %v188_v62  }
  0xb8   :  { %v194_v63 = vld [vmem:[#allocation0] sm:$0x1] }
  0xb9   :  { %196 = vst [vmem:[%s400_s1] sm:$0x1] %v194_v63 }

// kernel: causal_model_var_forward.1
= control target key start
LH: loop header
LB: loop body
LE: loop exit
PB: predicated region body
PF: predicated region fallthrough
CT: control target
= control target key end

     0   :  { %v1033_v3 = vmov 0.0   ;;  %vm683_vm0 = vcmask 523264   ;;  %s1689_s1 = inlined_call_operand.vmem [shape: f32[128,512], index: 1, kind: input, shape index: {}]   ;;  %s1690_s3 = inlined_call_operand.vmem [shape: f32[512,64], index: 3, kind: input, shape index: {}]   ;;  %s1691_s0 = inlined_call_operand.vmem [shape: f32[8,128], index: 0, kind: input, shape index: {}]   ;;  %s1692_s5 = inlined_call_operand.vmem [shape: f32[512,64], index: 5, kind: input, shape index: {}]   ;;  %s1693_s2 = inlined_call_operand.vmem [shape: f32[1,512], index: 2, kind: input, shape index: {}]   ;;  %s1694_s4 = inlined_call_operand.vmem [shape: f32[1,64], index: 4, kind: input, shape index: {}]   ;;  %s1695_s7 = inlined_call_operand.vmem [shape: f32[8,64], index: 7, kind: output, shape index: {0}]   ;;  %s1696_s6 = inlined_call_operand.vmem [shape: f32[1,64], index: 6, kind: input, shape index: {}]   ;;  %s1697_s8 = inlined_call_operand.vmem [shape: f32[8,64], index: 8, kind: output, shape index: {1}]  }
   0x1   :  { %v30_v0 = vld [vmem:[%s1689_s1 + $0x8] sm:$0xff]  ;;  %v32_v2 = vld [vmem:[%s1689_s1 + $0x18] sm:$0xff]  ;;  %179 = vmatprep.mubr.f32.mxu0 %v1033_v3  ;;  %250 = vmatprep.mubr.f32.mxu1 %v1033_v3  ;;  %v29_v6 = vld [vmem:[%s1689_s1] sm:$0xff] }
   0x2   :  { %v34_v1 = vld [vmem:[%s1689_s1 + $0x28] sm:$0xff]  ;;  %v36_v5 = vld [vmem:[%s1689_s1 + $0x38] sm:$0xff]  ;;  %v33_v7 = vld [vmem:[%s1689_s1 + $0x20] sm:$0xff] }
   0x3   :  { %v838_v4 = vpack.c.bf16 %v34_v1, %v30_v0  ;;  %v870_v8 = vpack.c.bf16 %v36_v5, %v32_v2  ;;  %v840_v9 = vpack.c.bf16 %v33_v7, %v29_v6  ;;  %v31_v10 = vld [vmem:[%s1689_s1 + $0x10] sm:$0xff]  ;;  %v38_v12 = vld [vmem:[%s1689_s1 + $0x48] sm:$0xff]  ;;  %v40_v15 = vld [vmem:[%s1689_s1 + $0x58] sm:$0xff] }
   0x4   :  { %v35_v11 = vld [vmem:[%s1689_s1 + $0x30] sm:$0xff]  ;;  %v42_v14 = vld [vmem:[%s1689_s1 + $0x68] sm:$0xff]  ;;  %v44_v16 = vld [vmem:[%s1689_s1 + $0x78] sm:$0xff] }
   0x5   :  { %839 = vmatprep.subr.bf16.mxu0 %v838_v4  ;;  %v872_v13 = vpack.c.bf16 %v35_v11, %v31_v10  ;;  %871 = vmatprep.subr.bf16.mxu1 %v870_v8  ;;  %v842_v17 = vpack.c.bf16 %v42_v14, %v38_v12  ;;  %v874_v18 = vpack.c.bf16 %v44_v16, %v40_v15  ;;  %v37_v19 = vld [vmem:[%s1689_s1 + $0x40] sm:$0xff]  ;;  %v39_v21 = vld [vmem:[%s1689_s1 + $0x50] sm:$0xff]  ;;  %v46_v24 = vld [vmem:[%s1689_s1 + $0x88] sm:$0xff] }
   0x6   :  { %841 = vmatpush1.bf16.msra.mxu0 %v840_v9  ;;  %v41_v20 = vld [vmem:[%s1689_s1 + $0x60] sm:$0xff]  ;;  %v43_v23 = vld [vmem:[%s1689_s1 + $0x70] sm:$0xff]  ;;  %v50_v25 = vld [vmem:[%s1689_s1 + $0xa8] sm:$0xff] }
   0x7   :  { %873 = vmatpush1.bf16.msra.mxu1 %v872_v13  ;;  %v844_v22 = vpack.c.bf16 %v41_v20, %v37_v19  ;;  %843 = vmatprep.subr.bf16.mxu0 %v842_v17  ;;  %v876_v26 = vpack.c.bf16 %v43_v23, %v39_v21  ;;  %v846_v27 = vpack.c.bf16 %v50_v25, %v46_v24  ;;  %v48_v28 = vld [vmem:[%s1689_s1 + $0x98] sm:$0xff]  ;;  %v45_v30 = vld [vmem:[%s1689_s1 + $0x80] sm:$0xff]  ;;  %v47_v33 = vld [vmem:[%s1689_s1 + $0x90] sm:$0xff] }
   0x8   :  { %875 = vmatprep.subr.bf16.mxu1 %v874_v18  ;;  %v52_v29 = vld [vmem:[%s1689_s1 + $0xb8] sm:$0xff]  ;;  %v49_v32 = vld [vmem:[%s1689_s1 + $0xa0] sm:$0xff]  ;;  %v51_v34 = vld [vmem:[%s1689_s1 + $0xb0] sm:$0xff] }
   0x9   :  { %v878_v31 = vpack.c.bf16 %v52_v29, %v48_v28  ;;  %v848_v35 = vpack.c.bf16 %v49_v32, %v45_v30  ;;  %v54_v36 = vld [vmem:[%s1689_s1 + $0xc8] sm:$0xff]  ;;  %v56_v38 = vld [vmem:[%s1689_s1 + $0xd8] sm:$0xff]  ;;  %v880_v39 = vpack.c.bf16 %v51_v34, %v47_v33  ;;  %v53_v42 = vld [vmem:[%s1689_s1 + $0xc0] sm:$0xff] }
   0xa   :  { %845 = vmatpush1.bf16.msra.mxu0 %v844_v22  ;;  %v58_v37 = vld [vmem:[%s1689_s1 + $0xe8] sm:$0xff]  ;;  %v60_v41 = vld [vmem:[%s1689_s1 + $0xf8] sm:$0xff]  ;;  %v57_v43 = vld [vmem:[%s1689_s1 + $0xe0] sm:$0xff] }
   0xb   :  { %877 = vmatpush1.bf16.msra.mxu1 %v876_v26  ;;  %847 = vmatprep.subr.bf16.mxu0 %v846_v27  ;;  %v850_v40 = vpack.c.bf16 %v58_v37, %v54_v36  ;;  %v882_v44 = vpack.c.bf16 %v60_v41, %v56_v38  ;;  %v55_v45 = vld [vmem:[%s1689_s1 + $0xd0] sm:$0xff]  ;;  %v62_v47 = vld [vmem:[%s1689_s1 + $0x108] sm:$0xff]  ;;  %v64_v49 = vld [vmem:[%s1689_s1 + $0x118] sm:$0xff]  ;;  %v852_v51 = vpack.c.bf16 %v57_v43, %v53_v42 }
   0xc   :  { %879 = vmatprep.subr.bf16.mxu1 %v878_v31  ;;  %v59_v46 = vld [vmem:[%s1689_s1 + $0xf0] sm:$0xff]  ;;  %v66_v48 = vld [vmem:[%s1689_s1 + $0x128] sm:$0xff]  ;;  %v68_v50 = vld [vmem:[%s1689_s1 + $0x138] sm:$0xff] }
   0xd   :  { %v884_v52 = vpack.c.bf16 %v59_v46, %v55_v45  ;;  %v854_v53 = vpack.c.bf16 %v66_v48, %v62_v47  ;;  %v61_v54 = vld [vmem:[%s1689_s1 + $0x100] sm:$0xff]  ;;  %v63_v56 = vld [vmem:[%s1689_s1 + $0x110] sm:$0xff]  ;;  %v886_v57 = vpack.c.bf16 %v68_v50, %v64_v49  ;;  %v70_v59 = vld [vmem:[%s1689_s1 + $0x148] sm:$0xff] }
   0xe   :  { %849 = vmatpush1.bf16.msra.mxu0 %v848_v35  ;;  %v65_v55 = vld [vmem:[%s1689_s1 + $0x120] sm:$0xff]  ;;  %v67_v58 = vld [vmem:[%s1689_s1 + $0x130] sm:$0xff]  ;;  %v74_v60 = vld [vmem:[%s1689_s1 + $0x168] sm:$0xff] }
   0xf   :  { %881 = vmatpush1.bf16.msra.mxu1 %v880_v39  ;;  %851 = vmatprep.subr.bf16.mxu0 %v850_v40  ;;  %v72_v61 = vld [vmem:[%s1689_s1 + $0x158] sm:$0xff]  ;;  %v856_v63 = vpack.c.bf16 %v65_v55, %v61_v54  ;;  %v888_v0 = vpack.c.bf16 %v67_v58, %v63_v56  ;;  %v858_v1 = vpack.c.bf16 %v74_v60, %v70_v59  ;;  %v69_v2 = vld [vmem:[%s1689_s1 + $0x140] sm:$0xff]  ;;  %v71_v4 = vld [vmem:[%s1689_s1 + $0x150] sm:$0xff] }
  0x10   :  { %883 = vmatprep.subr.bf16.mxu1 %v882_v44  ;;  %v76_v62 = vld [vmem:[%s1689_s1 + $0x178] sm:$0xff]  ;;  %v73_v3 = vld [vmem:[%s1689_s1 + $0x160] sm:$0xff]  ;;  %v75_v6 = vld [vmem:[%s1689_s1 + $0x170] sm:$0xff] }
  0x11   :  { %v890_v5 = vpack.c.bf16 %v76_v62, %v72_v61  ;;  %v78_v7 = vld [vmem:[%s1689_s1 + $0x188] sm:$0xff]  ;;  %v80_v9 = vld [vmem:[%s1689_s1 + $0x198] sm:$0xff]  ;;  %v860_v11 = vpack.c.bf16 %v73_v3, %v69_v2  ;;  %v892_v12 = vpack.c.bf16 %v75_v6, %v71_v4  ;;  %v77_v14 = vld [vmem:[%s1689_s1 + $0x180] sm:$0xff] }
  0x12   :  { %853 = vmatpush1.bf16.msra.mxu0 %v852_v51  ;;  %v82_v8 = vld [vmem:[%s1689_s1 + $0x1a8] sm:$0xff]  ;;  %v84_v10 = vld [vmem:[%s1689_s1 + $0x1b8] sm:$0xff]  ;;  %v81_v15 = vld [vmem:[%s1689_s1 + $0x1a0] sm:$0xff] }
  0x13   :  { %885 = vmatpush1.bf16.msra.mxu1 %v884_v52  ;;  %855 = vmatprep.subr.bf16.mxu0 %v854_v53  ;;  %v862_v13 = vpack.c.bf16 %v82_v8, %v78_v7  ;;  %v79_v16 = vld [vmem:[%s1689_s1 + $0x190] sm:$0xff]  ;;  %v894_v17 = vpack.c.bf16 %v84_v10, %v80_v9  ;;  %v86_v19 = vld [vmem:[%s1689_s1 + $0x1c8] sm:$0xff]  ;;  %v88_v21 = vld [vmem:[%s1689_s1 + $0x1d8] sm:$0xff]  ;;  %v864_v23 = vpack.c.bf16 %v81_v15, %v77_v14 }
  0x14   :  { %887 = vmatprep.subr.bf16.mxu1 %v886_v57  ;;  %v83_v18 = vld [vmem:[%s1689_s1 + $0x1b0] sm:$0xff]  ;;  %v90_v20 = vld [vmem:[%s1689_s1 + $0x1e8] sm:$0xff]  ;;  %v92_v22 = vld [vmem:[%s1689_s1 + $0x1f8] sm:$0xff] }
  0x15   :  { %v896_v24 = vpack.c.bf16 %v83_v18, %v79_v16  ;;  %v866_v25 = vpack.c.bf16 %v90_v20, %v86_v19  ;;  %v85_v26 = vld [vmem:[%s1689_s1 + $0x1c0] sm:$0xff]  ;;  %v87_v28 = vld [vmem:[%s1689_s1 + $0x1d0] sm:$0xff]  ;;  %v898_v29 = vpack.c.bf16 %v92_v22, %v88_v21  ;;  %v278_v32 = vld [vmem:[%s1690_s3 + $0x88] sm:$0xff] }
  0x16   :  { %857 = vmatpush1.bf16.msra.mxu0 %v856_v63  ;;  %v89_v27 = vld [vmem:[%s1689_s1 + $0x1e0] sm:$0xff]  ;;  %v91_v30 = vld [vmem:[%s1689_s1 + $0x1f0] sm:$0xff]  ;;  %v310_v34 = vld [vmem:[%s1690_s3 + $0x188] sm:$0xff] }
  0x17   :  { %889 = vmatpush1.bf16.msra.mxu1 %v888_v0  ;;  %859 = vmatprep.subr.bf16.mxu0 %v858_v1  ;;  %v277_v31 = vld [vmem:[%s1690_s3 + $0x80] sm:$0xff]  ;;  %v868_v35 = vpack.c.bf16 %v89_v27, %v85_v26  ;;  %v900_v36 = vpack.c.bf16 %v91_v30, %v87_v28  ;;  %v262_v39 = vld [vmem:[%s1690_s3 + $0x8] sm:$0xff]  ;;  %v279_v43 = vld [vmem:[%s1690_s3 + $0x90] sm:$0xff] }
  0x18   :  { %891 = vmatprep.subr.bf16.mxu1 %v890_v5  ;;  %v309_v33 = vld [vmem:[%s1690_s3 + $0x180] sm:$0xff]  ;;  %v902_v37 = vpack.c.bf16 %v278_v32, %v277_v31  ;;  %v294_v42 = vld [vmem:[%s1690_s3 + $0x108] sm:$0xff]  ;;  %v280_v44 = vld [vmem:[%s1690_s3 + $0x98] sm:$0xff] }
  0x19   :  { %v261_v38 = vld [vmem:[%s1690_s3] sm:$0xff]  ;;  %v934_v41 = vpack.c.bf16 %v310_v34, %v309_v33  ;;  %v311_v45 = vld [vmem:[%s1690_s3 + $0x190] sm:$0xff]  ;;  %v312_v46 = vld [vmem:[%s1690_s3 + $0x198] sm:$0xff]  ;;  %v906_v50 = vpack.c.bf16 %v280_v44, %v279_v43 }
  0x1a   :  { %861 = vmatpush1.bf16.msra.mxu0 %v860_v11  ;;  %v293_v40 = vld [vmem:[%s1690_s3 + $0x100] sm:$0xff]  ;;  %v904_v48 = vpack.c.bf16 %v262_v39, %v261_v38  ;;  %v263_v51 = vld [vmem:[%s1690_s3 + $0x10] sm:$0xff]  ;;  %v264_v52 = vld [vmem:[%s1690_s3 + $0x18] sm:$0xff]  ;;  %v938_v54 = vpack.c.bf16 %v312_v46, %v311_v45 }
  0x1b   :  { %893 = vmatpush1.bf16.msra.mxu1 %v892_v12  ;;  %863 = vmatprep.subr.bf16.mxu0 %v862_v13  ;;  %v28_v47 = vld [vmem:[%s1691_s0] sm:$0xff]  ;;  %v936_v49 = vpack.c.bf16 %v294_v42, %v293_v40  ;;  %v295_v53 = vld [vmem:[%s1690_s3 + $0x110] sm:$0xff]  ;;  %v296_v55 = vld [vmem:[%s1690_s3 + $0x118] sm:$0xff]  ;;  %v908_v60 = vpack.c.bf16 %v264_v52, %v263_v51 }
  0x1c   :  { %895 = vmatprep.subr.bf16.mxu1 %v894_v17  ;;  %v281_v56 = vld [vmem:[%s1690_s3 + $0xa0] sm:$0xff]  ;;  %v282_v57 = vld [vmem:[%s1690_s3 + $0xa8] sm:$0xff]  ;;  %v940_v61 = vpack.c.bf16 %v296_v55, %v295_v53  ;;  %v283_v4 = vld [vmem:[%s1690_s3 + $0xb0] sm:$0xff] }
  0x1d   :  { %v313_v58 = vld [vmem:[%s1690_s3 + $0x1a0] sm:$0xff]  ;;  %v314_v59 = vld [vmem:[%s1690_s3 + $0x1a8] sm:$0xff]  ;;  %v910_v62 = vpack.c.bf16 %v282_v57, %v281_v56  ;;  %v284_v5 = vld [vmem:[%s1690_s3 + $0xb8] sm:$0xff] }
  0x1e   :  { %865 = vmatpush1.bf16.msra.mxu0 %v864_v23  ;;  %v265_v63 = vld [vmem:[%s1690_s3 + $0x20] sm:$0xff]  ;;  %v266_v0 = vld [vmem:[%s1690_s3 + $0x28] sm:$0xff]  ;;  %v942_v2 = vpack.c.bf16 %v314_v59, %v313_v58  ;;  %v315_v6 = vld [vmem:[%s1690_s3 + $0x1b0] sm:$0xff]  ;;  %v914_v10 = vpack.c.bf16 %v284_v5, %v283_v4 }
  0x1f   :  { %897 = vmatpush1.bf16.msra.mxu1 %v896_v24  ;;  %867 = vmatprep.subr.bf16.mxu0 %v866_v25  ;;  %v297_v1 = vld [vmem:[%s1690_s3 + $0x120] sm:$0xff]  ;;  %v298_v3 = vld [vmem:[%s1690_s3 + $0x128] sm:$0xff]  ;;  %v316_v7 = vld [vmem:[%s1690_s3 + $0x1b8] sm:$0xff]  ;;  %v912_v8 = vpack.c.bf16 %v266_v0, %v265_v63 }
  0x20   :  { %899 = vmatprep.subr.bf16.mxu1 %v898_v29  ;;  %v944_v9 = vpack.c.bf16 %v298_v3, %v297_v1  ;;  %v267_v11 = vld [vmem:[%s1690_s3 + $0x30] sm:$0xff]  ;;  %v268_v12 = vld [vmem:[%s1690_s3 + $0x38] sm:$0xff]  ;;  %v946_v14 = vpack.c.bf16 %v316_v7, %v315_v6  ;;  %v285_v16 = vld [vmem:[%s1690_s3 + $0xc0] sm:$0xff] }
  0x21   :  { %v299_v13 = vld [vmem:[%s1690_s3 + $0x130] sm:$0xff]  ;;  %v300_v15 = vld [vmem:[%s1690_s3 + $0x138] sm:$0xff]  ;;  %v286_v17 = vld [vmem:[%s1690_s3 + $0xc8] sm:$0xff]  ;;  %v916_v20 = vpack.c.bf16 %v268_v12, %v267_v11 }
  0x22   :  { %869 = vmatpush1.bf16.msra.mxu0 %v868_v35  ;;  %v317_v18 = vld [vmem:[%s1690_s3 + $0x1c0] sm:$0xff]  ;;  %v318_v19 = vld [vmem:[%s1690_s3 + $0x1c8] sm:$0xff]  ;;  %v948_v21 = vpack.c.bf16 %v300_v15, %v299_v13  ;;  %v918_v22 = vpack.c.bf16 %v286_v17, %v285_v16  ;;  %v287_v28 = vld [vmem:[%s1690_s3 + $0xd0] sm:$0xff] }
  0x23   :  { %901 = vmatpush1.bf16.msra.mxu1 %v900_v36  ;;  %903 = vmatprep.subr.bf16.mxu0 %v902_v37  ;;  %v269_v23 = vld [vmem:[%s1690_s3 + $0x40] sm:$0xff]  ;;  %v270_v24 = vld [vmem:[%s1690_s3 + $0x48] sm:$0xff]  ;;  %v950_v26 = vpack.c.bf16 %v318_v19, %v317_v18  ;;  %v288_v29 = vld [vmem:[%s1690_s3 + $0xd8] sm:$0xff] }
  0x24   :  { %935 = vmatprep.subr.bf16.mxu1 %v934_v41  ;;  %v301_v25 = vld [vmem:[%s1690_s3 + $0x140] sm:$0xff]  ;;  %v302_v27 = vld [vmem:[%s1690_s3 + $0x148] sm:$0xff]  ;;  %v319_v30 = vld [vmem:[%s1690_s3 + $0x1d0] sm:$0xff]  ;;  %v920_v32 = vpack.c.bf16 %v270_v24, %v269_v23  ;;  %v922_v34 = vpack.c.bf16 %v288_v29, %v287_v28 }
  0x25   :  { %180 = vmatmul.mubr.f32.vlgmr.msra.gmra.mrb[0].mxu0 %v28_v47  ;;  %v320_v31 = vld [vmem:[%s1690_s3 + $0x1d8] sm:$0xff]  ;;  %v952_v33 = vpack.c.bf16 %v302_v27, %v301_v25  ;;  %v271_v35 = vld [vmem:[%s1690_s3 + $0x50] sm:$0xff]  ;;  %v289_v40 = vld [vmem:[%s1690_s3 + $0xe0] sm:$0xff] }
  0x26   :  { %251 = vmatmul.mubr.f32.vlgmr.msra.gmra.mrb[0].mxu1 %v28_v47  ;;  %905 = vmatpush3.bf16.msra.mxu0 %v904_v48  ;;  %v272_v36 = vld [vmem:[%s1690_s3 + $0x58] sm:$0xff]  ;;  %v303_v37 = vld [vmem:[%s1690_s3 + $0x150] sm:$0xff]  ;;  %v954_v38 = vpack.c.bf16 %v320_v31, %v319_v30  ;;  %v290_v41 = vld [vmem:[%s1690_s3 + $0xe8] sm:$0xff] }
  0x27   :  { %937 = vmatpush3.bf16.msra.mxu1 %v936_v49  ;;  %907 = vmatprep.subr.bf16.mxu0 %v906_v50  ;;  %v304_v39 = vld [vmem:[%s1690_s3 + $0x158] sm:$0xff]  ;;  %v321_v42 = vld [vmem:[%s1690_s3 + $0x1e0] sm:$0xff]  ;;  %v322_v43 = vld [vmem:[%s1690_s3 + $0x1e8] sm:$0xff]  ;;  %v924_v44 = vpack.c.bf16 %v272_v36, %v271_v35  ;;  %v926_v46 = vpack.c.bf16 %v290_v41, %v289_v40 }
  0x28   :  { %939 = vmatprep.subr.bf16.mxu1 %v938_v54  ;;  %v956_v45 = vpack.c.bf16 %v304_v39, %v303_v37  ;;  %v273_v47 = vld [vmem:[%s1690_s3 + $0x60] sm:$0xff]  ;;  %v274_v48 = vld [vmem:[%s1690_s3 + $0x68] sm:$0xff]  ;;  %v958_v49 = vpack.c.bf16 %v322_v43, %v321_v42  ;;  %v291_v54 = vld [vmem:[%s1690_s3 + $0xf0] sm:$0xff] }
  0x29   :  { %v305_v50 = vld [vmem:[%s1690_s3 + $0x160] sm:$0xff]  ;;  %v306_v51 = vld [vmem:[%s1690_s3 + $0x168] sm:$0xff]  ;;  %v928_v52 = vpack.c.bf16 %v274_v48, %v273_v47  ;;  %v292_v55 = vld [vmem:[%s1690_s3 + $0xf8] sm:$0xff] }
  0x2a   :  { %909 = vmatpush3.bf16.msra.mxu0 %v908_v60  ;;  %v960_v53 = vpack.c.bf16 %v306_v51, %v305_v50  ;;  %v323_v56 = vld [vmem:[%s1690_s3 + $0x1f0] sm:$0xff]  ;;  %v930_v57 = vpack.c.bf16 %v292_v55, %v291_v54  ;;  %v324_v58 = vld [vmem:[%s1690_s3 + $0x1f8] sm:$0xff]  ;;  %v489_v3 = vld [vmem:[%s1692_s5 + $0x88] sm:$0xff] }
  0x2b   :  { %941 = vmatpush3.bf16.msra.mxu1 %v940_v61  ;;  %911 = vmatprep.subr.bf16.mxu0 %v910_v62  ;;  %v275_v59 = vld [vmem:[%s1690_s3 + $0x70] sm:$0xff]  ;;  %v276_v60 = vld [vmem:[%s1690_s3 + $0x78] sm:$0xff]  ;;  %v962_v61 = vpack.c.bf16 %v324_v58, %v323_v56  ;;  %v520_v4 = vld [vmem:[%s1692_s5 + $0x180] sm:$0xff] }
  0x2c   :  { %943 = vmatprep.subr.bf16.mxu1 %v942_v2  ;;  %v932_v62 = vpack.c.bf16 %v276_v60, %v275_v59  ;;  %v307_v63 = vld [vmem:[%s1690_s3 + $0x170] sm:$0xff]  ;;  %v308_v0 = vld [vmem:[%s1690_s3 + $0x178] sm:$0xff]  ;;  %v488_v2 = vld [vmem:[%s1692_s5 + $0x80] sm:$0xff] }
  0x2d   :  { %v964_v1 = vpack.c.bf16 %v308_v0, %v307_v63  ;;  %v966_v5 = vpack.c.bf16 %v489_v3, %v488_v2  ;;  %v521_v6 = vld [vmem:[%s1692_s5 + $0x188] sm:$0xff]  ;;  %v93_v11 = vld [vmem:[%s1693_s2] sm:$0xf]  ;;  %v490_v31 = vld [vmem:[%s1692_s5 + $0x90] sm:$0xff] }
  0x2e   :  { %913 = vmatpush3.bf16.msra.mxu0 %v912_v8  ;;  %v998_v7 = vpack.c.bf16 %v521_v6, %v520_v4  ;;  %v95_v8 = vlaneseq  ;;  %v472_v23 = vld [vmem:[%s1692_s5] sm:$0xff]  ;;  %v473_v24 = vld [vmem:[%s1692_s5 + $0x8] sm:$0xff]  ;;  %v522_v36 = vld [vmem:[%s1692_s5 + $0x190] sm:$0xff] }
  0x2f   :  { %945 = vmatpush3.bf16.msra.mxu1 %v944_v9  ;;  %915 = vmatprep.subr.bf16.mxu0 %v914_v10  ;;  %v504_v28 = vld [vmem:[%s1692_s5 + $0x100] sm:$0xff]  ;;  %v505_v29 = vld [vmem:[%s1692_s5 + $0x108] sm:$0xff]  ;;  %v968_v35 = vpack.c.bf16 %v473_v24, %v472_v23  ;;  %v523_v37 = vld [vmem:[%s1692_s5 + $0x198] sm:$0xff] }
  0x30   :  { %947 = vmatprep.subr.bf16.mxu1 %v946_v14  ;;  %v96_v9 = vshrl.u32 %v95_v8, 7  ;;  %v1000_v40 = vpack.c.bf16 %v505_v29, %v504_v28  ;;  %v474_v41 = vld [vmem:[%s1692_s5 + $0x10] sm:$0xff]  ;;  %v475_v42 = vld [vmem:[%s1692_s5 + $0x18] sm:$0xff]  ;;  %v493_v47 = vld [vmem:[%s1692_s5 + $0xa8] sm:$0xff]  ;;  %v1002_v48 = vpack.c.bf16 %v523_v37, %v522_v36 }
  0x31   :  { %v506_v43 = vld [vmem:[%s1692_s5 + $0x110] sm:$0xff]  ;;  %v525_v50 = vld [vmem:[%s1692_s5 + $0x1a8] sm:$0xff]  ;;  %v972_v51 = vpack.c.bf16 %v475_v42, %v474_v41  ;;  %v476_v54 = vld [vmem:[%s1692_s5 + $0x20] sm:$0xff] }
  0x32   :  { %917 = vmatpush3.bf16.msra.mxu0 %v916_v20  ;;  %v97_v10 = vsub.s32 0, %v96_v9  ;;  %v105_v12 = vsub.s32 2, %v96_v9  ;;  %v101_v13 = vsub.s32 1, %v96_v9  ;;  %v109_v14 = vsub.s32 3, %v96_v9  ;;  %v477_v55 = vld [vmem:[%s1692_s5 + $0x28] sm:$0xff]  ;;  %v508_v56 = vld [vmem:[%s1692_s5 + $0x120] sm:$0xff] }
  0x33   :  { %949 = vmatpush3.bf16.msra.mxu1 %v948_v21  ;;  %919 = vmatprep.subr.bf16.mxu0 %v918_v22  ;;  %v509_v58 = vld [vmem:[%s1692_s5 + $0x128] sm:$0xff]  ;;  %v494_v59 = vld [vmem:[%s1692_s5 + $0xb0] sm:$0xff]  ;;  %v495_v60 = vld [vmem:[%s1692_s5 + $0xb8] sm:$0xff]  ;;  %v976_v63 = vpack.c.bf16 %v477_v55, %v476_v54 }
  0x34   :  { %951 = vmatprep.subr.bf16.mxu1 %v950_v26  ;;  %v98_v15 = vrot.slane %v93_v11, %v97_v10  ;;  %v106_v16 = vrot.slane %v93_v11, %v105_v12  ;;  %v102_v17 = vrot.slane %v93_v11, %v101_v13  ;;  %v110_v18 = vrot.slane %v93_v11, %v109_v14  ;;  %v478_v2 = vld [vmem:[%s1692_s5 + $0x30] sm:$0xff]  ;;  %v479_v3 = vld [vmem:[%s1692_s5 + $0x38] sm:$0xff]  ;;  %v497_v8 = vld [vmem:[%s1692_s5 + $0xc8] sm:$0xff] }
  0x35   :  { %v1008_v0 = vpack.c.bf16 %v509_v58, %v508_v56  ;;  %v510_v4 = vld [vmem:[%s1692_s5 + $0x130] sm:$0xff]  ;;  %v511_v6 = vld [vmem:[%s1692_s5 + $0x138] sm:$0xff]  ;;  %v528_v9 = vld [vmem:[%s1692_s5 + $0x1c0] sm:$0xff]  ;;  %v980_v11 = vpack.c.bf16 %v479_v3, %v478_v2 }
  0x36   :  { %921 = vmatpush3.bf16.msra.mxu0 %v920_v32  ;;  %v491_v32 = vld [vmem:[%s1692_s5 + $0x98] sm:$0xff]  ;;  %v529_v10 = vld [vmem:[%s1692_s5 + $0x1c8] sm:$0xff]  ;;  %v1012_v12 = vpack.c.bf16 %v511_v6, %v510_v4  ;;  %v480_v14 = vld [vmem:[%s1692_s5 + $0x40] sm:$0xff] }
  0x37   :  { %953 = vmatpush3.bf16.msra.mxu1 %v952_v33  ;;  %923 = vmatprep.subr.bf16.mxu0 %v922_v34  ;;  %v531_v23 = vld [vmem:[%s1692_s5 + $0x1d8] sm:$0xff]  ;;  %v482_v28 = vld [vmem:[%s1692_s5 + $0x50] sm:$0xff]  ;;  %v532_v36 = vld [vmem:[%s1692_s5 + $0x1e0] sm:$0xff] }
  0x38   :  { %955 = vmatprep.subr.bf16.mxu1 %v954_v38  ;;  %v483_v29 = vld [vmem:[%s1692_s5 + $0x58] sm:$0xff]  ;;  %v533_v37 = vld [vmem:[%s1692_s5 + $0x1e8] sm:$0xff]  ;;  %v484_v42 = vld [vmem:[%s1692_s5 + $0x60] sm:$0xff] }
  0x39   :  { %v486_v54 = vld [vmem:[%s1692_s5 + $0x70] sm:$0xff]  ;;  %v487_v55 = vld [vmem:[%s1692_s5 + $0x78] sm:$0xff] }
  0x3a   :  { %925 = vmatpush3.bf16.msra.mxu0 %v924_v44  ;;  %v970_v44 = vpack.c.bf16 %v491_v32, %v490_v31  ;;  %v515_v32 = vld [vmem:[%s1692_s5 + $0x158] sm:$0xff] }
  0x3b   :  { %957 = vmatpush3.bf16.msra.mxu1 %v956_v45  ;;  %927 = vmatprep.subr.bf16.mxu0 %v926_v46  ;;  %v507_v45 = vld [vmem:[%s1692_s5 + $0x118] sm:$0xff]  ;;  %v492_v46 = vld [vmem:[%s1692_s5 + $0xa0] sm:$0xff] }
  0x3c   :  { %959 = vmatprep.subr.bf16.mxu1 %v958_v49  ;;  %v524_v49 = vld [vmem:[%s1692_s5 + $0x1a0] sm:$0xff]  ;;  %v519_v58 = vld [vmem:[%s1692_s5 + $0x178] sm:$0xff] }
  0x3e   :  { %929 = vmatpush3.bf16.msra.mxu0 %v928_v52  ;;  %v1004_v52 = vpack.c.bf16 %v507_v45, %v506_v43  ;;  %v485_v43 = vld [vmem:[%s1692_s5 + $0x68] sm:$0xff]  ;;  %v1022_v45 = vpack.c.bf16 %v533_v37, %v532_v36 }
  0x3f   :  { %961 = vmatpush3.bf16.msra.mxu1 %v960_v53  ;;  %931 = vmatprep.subr.bf16.mxu0 %v930_v57  ;;  %v974_v53 = vpack.c.bf16 %v493_v47, %v492_v46  ;;  %v1006_v57 = vpack.c.bf16 %v525_v50, %v524_v49  ;;  %v517_v46 = vld [vmem:[%s1692_s5 + $0x168] sm:$0xff]  ;;  %v502_v47 = vld [vmem:[%s1692_s5 + $0xf0] sm:$0xff]  ;;  %v535_v50 = vld [vmem:[%s1692_s5 + $0x1f8] sm:$0xff] }
  0x40   :  { %963 = vmatprep.subr.bf16.mxu1 %v962_v61  ;;  %v526_v61 = vld [vmem:[%s1692_s5 + $0x1b0] sm:$0xff] }
  0x41   :  { %v534_v49 = vld [vmem:[%s1692_s5 + $0x1f0] sm:$0xff] }
  0x42   :  { %933 = vmatpush3.bf16.msra.mxu0 %v932_v62  ;;  %v527_v62 = vld [vmem:[%s1692_s5 + $0x1b8] sm:$0xff]  ;;  %v1026_v56 = vpack.c.bf16 %v535_v50, %v534_v49 }
  0x43   :  { %965 = vmatpush3.bf16.msra.mxu1 %v964_v1  ;;  %967 = vmatprep.subr.bf16.mxu0 %v966_v5  ;;  %v978_v1 = vpack.c.bf16 %v495_v60, %v494_v59  ;;  %v1010_v5 = vpack.c.bf16 %v527_v62, %v526_v61  ;;  %v996_v59 = vpack.c.bf16 %v487_v55, %v486_v54 }
  0x44   :  { %999 = vmatprep.subr.bf16.mxu1 %v998_v7  ;;  %v496_v7 = vld [vmem:[%s1692_s5 + $0xc0] sm:$0xff] }
  0x45   :  { %v982_v13 = vpack.c.bf16 %v497_v8, %v496_v7 }
  0xf8   :  { %v181_v19 = vpop.f32.mrb[0].mxu0 }
  0xf9   :  { %v1481_v20 = vadd.f32 %v181_v19, %v98_v15  ;;  %v252_v21 = vpop.f32.mrb[0].mxu1  ;;  %v183_v22 = vpop.f32.mrb[1].mxu0  ;;  %v481_v15 = vld [vmem:[%s1692_s5 + $0x48] sm:$0xff]  ;;  %v498_v19 = vld [vmem:[%s1692_s5 + $0xd0] sm:$0xff] }
  0xfa   :  { %v1489_v25 = vadd.f32 %v252_v21, %v106_v16  ;;  %v184_v26 = vadd.f32 %v183_v22, %v102_v17  ;;  %v254_v27 = vpop.f32.mrb[1].mxu1  ;;  %v512_v16 = vld [vmem:[%s1692_s5 + $0x140] sm:$0xff]  ;;  %v1014_v17 = vpack.c.bf16 %v529_v10, %v528_v9  ;;  %v499_v21 = vld [vmem:[%s1692_s5 + $0xd8] sm:$0xff]  ;;  %v530_v22 = vld [vmem:[%s1692_s5 + $0x1d0] sm:$0xff]  ;;  %v984_v24 = vpack.c.bf16 %v481_v15, %v480_v14 }
  0xfb   :  { %v255_v30 = vadd.f32 %v254_v27, %v110_v18  ;;  %v257_v38 = vmax.f32 %v1481_v20, 0.0  ;;  %v513_v18 = vld [vmem:[%s1692_s5 + $0x148] sm:$0xff]  ;;  %v986_v27 = vpack.c.bf16 %v499_v21, %v498_v19  ;;  %v1018_v31 = vpack.c.bf16 %v531_v23, %v530_v22 }
  0xfc   :  { %v259_v33 = vmax.f32 %v1489_v25, 0.0  ;;  %v258_v34 = vmax.f32 %v184_v26, 0.0  ;;  %v1016_v26 = vpack.c.bf16 %v513_v18, %v512_v16 }
  0xfd   :  { %v260_v39 = vmax.f32 %v255_v30, 0.0  ;;  %v514_v30 = vld [vmem:[%s1692_s5 + $0x150] sm:$0xff] }
  0xfe   :  { %396 = vmatprep.mubr.f32.mxu0 %v258_v34 }
  0xff   :  { %466 = vmatprep.mubr.f32.mxu1 %v260_v39  ;;  %397 = vmatmul.mubr.f32.vlgmr.msra.gmra.mrb[2].mxu0 %v257_v38 }
 0x100   :  { %467 = vmatmul.mubr.f32.vlgmr.msra.gmra.mrb[2].mxu1 %v259_v33  ;;  %969 = vmatpush3.bf16.msra.mxu0 %v968_v35  ;;  %v501_v35 = vld [vmem:[%s1692_s5 + $0xe8] sm:$0xff] }
 0x101   :  { %1001 = vmatpush3.bf16.msra.mxu1 %v1000_v40  ;;  %607 = vmatprep.mubr.f32.mxu0 %v258_v34  ;;  %v500_v34 = vld [vmem:[%s1692_s5 + $0xe0] sm:$0xff]  ;;  %v1020_v40 = vpack.c.bf16 %v515_v32, %v514_v30 }
 0x102   :  { %677 = vmatprep.mubr.f32.mxu1 %v260_v39  ;;  %971 = vmatprep.subr.bf16.mxu0 %v970_v44  ;;  %v988_v39 = vpack.c.bf16 %v483_v29, %v482_v28  ;;  %v990_v41 = vpack.c.bf16 %v501_v35, %v500_v34  ;;  %v516_v44 = vld [vmem:[%s1692_s5 + $0x160] sm:$0xff] }
 0x103   :  { %1003 = vmatprep.subr.bf16.mxu1 %v1002_v48  ;;  %v503_v48 = vld [vmem:[%s1692_s5 + $0xf8] sm:$0xff] }
 0x104   :  { %973 = vmatpush3.bf16.msra.mxu0 %v972_v51  ;;  %v992_v51 = vpack.c.bf16 %v485_v43, %v484_v42 }
 0x105   :  { %1005 = vmatpush3.bf16.msra.mxu1 %v1004_v52  ;;  %975 = vmatprep.subr.bf16.mxu0 %v974_v53  ;;  %v1024_v52 = vpack.c.bf16 %v517_v46, %v516_v44  ;;  %v994_v53 = vpack.c.bf16 %v503_v48, %v502_v47 }
 0x106   :  { %1007 = vmatprep.subr.bf16.mxu1 %v1006_v57  ;;  %v518_v57 = vld [vmem:[%s1692_s5 + $0x170] sm:$0xff] }
 0x107   :  { %v1028_v60 = vpack.c.bf16 %v519_v58, %v518_v57 }
 0x108   :  { %977 = vmatpush3.bf16.msra.mxu0 %v976_v63  ;;  %v696_v63 = vld [vmem:[%s1694_s4] ss:$0 sm:$0xff] }
 0x109   :  { %1009 = vmatpush3.bf16.msra.mxu1 %v1008_v0  ;;  %979 = vmatprep.subr.bf16.mxu0 %v978_v1 }
 0x10a   :  { %1011 = vmatprep.subr.bf16.mxu1 %v1010_v5 }
 0x10c   :  { %981 = vmatpush3.bf16.msra.mxu0 %v980_v11 }
 0x10d   :  { %1013 = vmatpush3.bf16.msra.mxu1 %v1012_v12  ;;  %983 = vmatprep.subr.bf16.mxu0 %v982_v13 }
 0x10e   :  { %1015 = vmatprep.subr.bf16.mxu1 %v1014_v17 }
 0x110   :  { %985 = vmatpush3.bf16.msra.mxu0 %v984_v24 }
 0x111   :  { %1017 = vmatpush3.bf16.msra.mxu1 %v1016_v26  ;;  %987 = vmatprep.subr.bf16.mxu0 %v986_v27 }
 0x112   :  { %1019 = vmatprep.subr.bf16.mxu1 %v1018_v31 }
 0x114   :  { %989 = vmatpush3.bf16.msra.mxu0 %v988_v39 }
 0x115   :  { %1021 = vmatpush3.bf16.msra.mxu1 %v1020_v40  ;;  %991 = vmatprep.subr.bf16.mxu0 %v990_v41 }
 0x116   :  { %1023 = vmatprep.subr.bf16.mxu1 %v1022_v45 }
 0x118   :  { %993 = vmatpush3.bf16.msra.mxu0 %v992_v51 }
 0x119   :  { %1025 = vmatpush3.bf16.msra.mxu1 %v1024_v52  ;;  %995 = vmatprep.subr.bf16.mxu0 %v994_v53 }
 0x11a   :  { %1027 = vmatprep.subr.bf16.mxu1 %v1026_v56 }
 0x11c   :  { %997 = vmatpush3.bf16.msra.mxu0 %v996_v59 }
 0x11d   :  { %1029 = vmatpush3.bf16.msra.mxu1 %v1028_v60 }
 0x11f   :  { %608 = vmatmul.mubr.f32.vlgmr.msra.gmra.mrb[4].mxu0 %v257_v38 }
 0x120   :  { %678 = vmatmul.mubr.f32.vlgmr.msra.gmra.mrb[4].mxu1 %v259_v33  ;;  %v697_v33 = vld [vmem:[%s1696_s6] ss:$0 sm:$0xff] }
 0x1d2   :  { %v730_v61 = vpop.f32.mrb[2].mxu0 }
 0x1d3   :  { %v765_v62 = vpop.f32.mrb[2].mxu1  ;;  %v731_v0 = vpop.f32.mrb[3].mxu0 }
 0x1d4   :  { %v732_v1 = vadd.f32 %v731_v0, %v730_v61  ;;  %v766_v2 = vpop.f32.mrb[3].mxu1 }
 0x1d5   :  { %v767_v3 = vadd.f32 %v766_v2, %v765_v62 }
 0x1d6   :  { %v399_v4 = vadd.f32 %v732_v1, %v696_v63 }
 0x1d8   :  { %v469_v5 = vadd.f32 %v767_v3, %v399_v4 }
 0x1da   :  { %684 = vst.msk [vmem:[%s1695_s7] sm:$0xff] %vm683_vm0, %v469_v5 }
 0x1f2   :  { %v800_v20 = vpop.f32.mrb[4].mxu0 }
 0x1f3   :  { %v835_v25 = vpop.f32.mrb[4].mxu1  ;;  %v801_v38 = vpop.f32.mrb[5].mxu0 }
 0x1f4   :  { %v802_v6 = vadd.f32 %v801_v38, %v800_v20  ;;  %v836_v7 = vpop.f32.mrb[5].mxu1 }
 0x1f5   :  { %v837_v8 = vadd.f32 %v836_v7, %v835_v25 }
 0x1f6   :  { %v610_v9 = vadd.f32 %v802_v6, %v697_v33 }
 0x1f8   :  { %v680_v10 = vadd.f32 %v837_v8, %v610_v9 }
 0x1fa   :  { %v685_v11 = vmul.f32 1.442695, %v680_v10 }
 0x1fc   :  { %1031 = vpow2.f32 %v685_v11 }
 0x206   :  { %v1032_v12 = vpop.eup %1031 }
 0x207   :  { %687 = vst.msk [vmem:[%s1697_s8] sm:$0xff] %vm683_vm0, %v1032_v12 }

</bundles_post_ra>
